<compile_context>
chip_gen: v7x
topology: tpu7x:2x2x1
jax: 0.10.0
libtpu: 0.0.40
codegen_flags: <defaults>
</compile_context>

<pallas_src>
import functools

import jax
import jax.numpy as jnp
import numpy as np
from jax.experimental import pallas as pl
from jax.experimental.pallas import tpu as pltpu


def _make_kernel(n_keypoints, max_len):
    kp1 = float(n_keypoints + 1)
    ml1 = float(max_len + 1)

    def kernel(kp_s_ref, v_s_ref, kp_t_ref, v_t_ref, ws_ref, wt_ref,
               out_s_ref, out_t_ref):
        # kp_s_ref: (3, BB*T, K)   v_s_ref: (BB*T, K)
        # kp_t_ref: (3, BB*K, T)   v_t_ref: (BB*K, T)
        # ws_ref:   (4K, E)        wt_ref:  (4T, E)
        v_s = v_s_ref[...]
        v_t = v_t_ref[...]

        # Fused lhs: [x*v | y*v | z*v | v] along the contraction (lane) axis.
        a_s = jnp.concatenate(
            [kp_s_ref[0] * v_s, kp_s_ref[1] * v_s, kp_s_ref[2] * v_s, v_s],
            axis=-1)                                            # (BB*T, 4K)
        a_t = jnp.concatenate(
            [kp_t_ref[0] * v_t, kp_t_ref[1] * v_t, kp_t_ref[2] * v_t, v_t],
            axis=-1)                                            # (BB*K, 4T)

        # One MXU matmul per branch (weights + biases fused into the rhs).
        spatial = jnp.dot(a_s, ws_ref[...],
                          preferred_element_type=jnp.float32)   # (BB*T, E)
        temporal = jnp.dot(a_t, wt_ref[...],
                           preferred_element_type=jnp.float32)  # (BB*K, E)

        # Data-dependent scales from the valid-count reductions (lane reduce).
        s_scale = kp1 / (jnp.sum(v_s, axis=-1, keepdims=True) + 1.0)   # (BB*T, 1)
        t_scale = ml1 / (jnp.sum(v_t, axis=-1, keepdims=True) + 1.0)   # (BB*K, 1)

        out_s_ref[...] = jnp.maximum(spatial * s_scale, 0.0)
        out_t_ref[...] = jnp.maximum(temporal * t_scale, 0.0)

    return kernel


@functools.partial(jax.jit, static_argnames=("max_len", "batch_block"))
def tokenizer_forward(keypoints, valid, W_s, b_s, W_t_full, b_t_full, *,
                      max_len, batch_block=128):
    """keypoints: (B,T,K,3) f32, valid: (B,T,K) f32 -> (B, T+K, E) f32."""
    B, T, K, _ = keypoints.shape
    E = b_s.shape[-1]

    # Batch blocking: BB elements per grid step (single step for tiny batches).
    BB = min(B, batch_block)
    pad = (-B) % BB
    Bp = B + pad
    if pad:
        # Zero-padded batch rows have valid == 0 -> contribute relu(0) and are sliced off.
        keypoints = jnp.pad(keypoints, ((0, pad), (0, 0), (0, 0), (0, 0)))
        valid = jnp.pad(valid, ((0, pad), (0, 0), (0, 0)))
    NB = Bp // BB

    # Contraction-friendly 2-D layouts, built once by XLA in the wrapper.
    kp_sp = jnp.transpose(keypoints, (3, 0, 1, 2)).reshape(3, Bp * T, K)  # lanes = K
    v_sp = valid.reshape(Bp * T, K)
    kp_tm = jnp.transpose(keypoints, (3, 0, 2, 1)).reshape(3, Bp * K, T)  # lanes = T
    v_tm = jnp.transpose(valid, (0, 2, 1)).reshape(Bp * K, T)

    # Fused weights: rows ordered [W_x; W_y; W_z; bias] to match the lhs concat order.
    W_s_f = jnp.concatenate([W_s[0], W_s[1], W_s[2], b_s], axis=0)        # (4K, E)
    W_t = W_t_full[:, :T, :]        # only the first T temporal Linears are used
    b_t = b_t_full[:T, :]
    W_t_f = jnp.concatenate([W_t[0], W_t[1], W_t[2], b_t], axis=0)        # (4T, E)

    kernel = _make_kernel(K, max_len)

    # Per-step VMEM: ~(8*T*K + (T+K)*E)*BB*4B (double-buffered) + fused weights;
    # well under the scoped-VMEM default even at BB=128, so no vmem_limit override.
    out_sp, out_tm = pl.pallas_call(
        kernel,
        out_shape=(jax.ShapeDtypeStruct((Bp * T, E), jnp.float32),
                   jax.ShapeDtypeStruct((Bp * K, E), jnp.float32)),
        grid_spec=pltpu.PrefetchScalarGridSpec(
            num_scalar_prefetch=0,
            grid=(NB,),
            in_specs=[
                pl.BlockSpec((3, BB * T, K), lambda i: (0, i, 0)),
                pl.BlockSpec((BB * T, K), lambda i: (i, 0)),
                pl.BlockSpec((3, BB * K, T), lambda i: (0, i, 0)),
                pl.BlockSpec((BB * K, T), lambda i: (i, 0)),
                pl.BlockSpec((4 * K, E), lambda i: (0, 0)),   # weights stay resident
                pl.BlockSpec((4 * T, E), lambda i: (0, 0)),
            ],
            out_specs=[
                pl.BlockSpec((BB * T, E), lambda i: (i, 0)),
                pl.BlockSpec((BB * K, E), lambda i: (i, 0)),
            ],
        ),
        compiler_params=pltpu.CompilerParams(dimension_semantics=("parallel",)),
    )(kp_sp, v_sp, kp_tm, v_tm, W_s_f, W_t_f)

    spatial = out_sp[:B * T].reshape(B, T, E)
    temporal = out_tm[:B * K].reshape(B, K, E)
    return jnp.concatenate([spatial, temporal], axis=1)


def tokenizer_ref(keypoints, valid, W_s, b_s, W_t_full, b_t_full, max_len):
    """Pure-JAX mirror of the PyTorch forward (correctness oracle)."""
    B, T, K, _ = keypoints.shape
    E = b_s.shape[-1]
    spatial = jnp.zeros((B, T, E), jnp.float32)
    for i in range(K):
        kp_emb = jnp.einsum('btc,ce->bte', keypoints[:, :, i, :], W_s[:, i, :]) + b_s[i]
        spatial = spatial + kp_emb * valid[:, :, i][..., None]
    s_counts = valid.sum(axis=-1, keepdims=True)
    spatial = spatial * ((K + 1) / (s_counts + 1))

    temporal = jnp.zeros((B, K, E), jnp.float32)
    for t in range(T):
        kp_emb = jnp.einsum('bkc,ce->bke', keypoints[:, t, :, :], W_t_full[:, t, :]) + b_t_full[t]
        temporal = temporal + kp_emb * valid[:, t, :][..., None]
    t_counts = valid.sum(axis=-2, keepdims=True)            # (B, 1, K)
    temporal = temporal * ((max_len + 1) / (jnp.transpose(t_counts, (0, 2, 1)) + 1))

    out = jnp.concatenate([spatial, temporal], axis=1)
    return jnp.maximum(out, 0.0)


if __name__ == "__main__":
    # Small shapes consistent with the module.
    B, T, K, E = 2, 8, 4, 32          # batch, frames, n_keypoints, n_embd
    MAX_LEN = 8                       # max_len (T <= max_len)

    key = jax.random.PRNGKey(0)
    k_kp, k_v, k_ws, k_bs, k_wt, k_bt = jax.random.split(key, 6)

    keypoints = jax.random.normal(k_kp, (B, T, K, 3), jnp.float32)
    valid = (jax.random.uniform(k_v, (B, T, K)) > 0.3).astype(jnp.float32)

    # nn.Linear(3, E) default init: U(-1/sqrt(3), 1/sqrt(3)) for weight and bias.
    bound = 1.0 / np.sqrt(3.0)
    W_s = jax.random.uniform(k_ws, (3, K, E), jnp.float32, -bound, bound)            # [c, k, e]
    b_s = jax.random.uniform(k_bs, (K, E), jnp.float32, -bound, bound)
    W_t_full = jax.random.uniform(k_wt, (3, MAX_LEN, E), jnp.float32, -bound, bound)  # [c, t, e]
    b_t_full = jax.random.uniform(k_bt, (MAX_LEN, E), jnp.float32, -bound, bound)

    out = tokenizer_forward(keypoints, valid, W_s, b_s, W_t_full, b_t_full,
                            max_len=MAX_LEN)
    out = jax.block_until_ready(out)

    ref = tokenizer_ref(keypoints, valid, W_s, b_s, W_t_full, b_t_full, MAX_LEN)
    np.testing.assert_allclose(np.asarray(out), np.asarray(ref), rtol=1e-4, atol=1e-4)
    assert out.shape == (B, T + K, E) and out.dtype == jnp.float32

    print("KERNEL_OK")
</pallas_src>

<mosaic_0001>
module attributes {stable_mosaic.version = 11 : i64} {
  func.func @kernel(%arg0: i32, %arg1: memref<3x16x4xf32, #tpu.memory_space<vmem>>, %arg2: memref<16x4xf32, #tpu.memory_space<vmem>>, %arg3: memref<3x8x8xf32, #tpu.memory_space<vmem>>, %arg4: memref<8x8xf32, #tpu.memory_space<vmem>>, %arg5: memref<16x32xf32, #tpu.memory_space<vmem>>, %arg6: memref<32x32xf32, #tpu.memory_space<vmem>>, %arg7: memref<16x32xf32, #tpu.memory_space<vmem>>, %arg8: memref<8x32xf32, #tpu.memory_space<vmem>>) attributes {dimension_semantics = [#tpu.dimension_semantics<parallel>], iteration_bounds = array<i64: 1>, scalar_prefetch = 0 : i64, scratch_operands = 0 : i64, tpu.core_type = #tpu.core_type<tc>, window_params = [{transform_indices = @transform_0, window_bounds = array<i64: 3, 16, 4>}, {transform_indices = @transform_1, window_bounds = array<i64: 16, 4>}, {transform_indices = @transform_2, window_bounds = array<i64: 3, 8, 8>}, {transform_indices = @transform_3, window_bounds = array<i64: 8, 8>}, {pipeline_mode = #tpu.pipeline_mode<synchronous>, transform_indices = @transform_4, window_bounds = array<i64: 16, 32>}, {pipeline_mode = #tpu.pipeline_mode<synchronous>, transform_indices = @transform_5, window_bounds = array<i64: 32, 32>}, {transform_indices = @transform_6, window_bounds = array<i64: 16, 32>}, {transform_indices = @transform_7, window_bounds = array<i64: 8, 32>}]} {
    %c0 = arith.constant 0 : index
    %c0_0 = arith.constant 0 : index
    %0 = vector.load %arg2[%c0, %c0_0] : memref<16x4xf32, #tpu.memory_space<vmem>>, vector<16x4xf32>
    %c0_1 = arith.constant 0 : index
    %c0_2 = arith.constant 0 : index
    %1 = vector.load %arg4[%c0_1, %c0_2] : memref<8x8xf32, #tpu.memory_space<vmem>>, vector<8x8xf32>
    %c0_3 = arith.constant 0 : index
    %c0_4 = arith.constant 0 : index
    %c0_5 = arith.constant 0 : index
    %2 = vector.load %arg1[%c0_3, %c0_4, %c0_5] : memref<3x16x4xf32, #tpu.memory_space<vmem>>, vector<1x16x4xf32>
    %3 = vector.shape_cast %2 : vector<1x16x4xf32> to vector<16x4xf32>
    %4 = arith.mulf %3, %0 : vector<16x4xf32>
    %c1 = arith.constant 1 : index
    %c0_6 = arith.constant 0 : index
    %c0_7 = arith.constant 0 : index
    %5 = vector.load %arg1[%c1, %c0_6, %c0_7] : memref<3x16x4xf32, #tpu.memory_space<vmem>>, vector<1x16x4xf32>
    %6 = vector.shape_cast %5 : vector<1x16x4xf32> to vector<16x4xf32>
    %7 = arith.mulf %6, %0 : vector<16x4xf32>
    %c2 = arith.constant 2 : index
    %c0_8 = arith.constant 0 : index
    %c0_9 = arith.constant 0 : index
    %8 = vector.load %arg1[%c2, %c0_8, %c0_9] : memref<3x16x4xf32, #tpu.memory_space<vmem>>, vector<1x16x4xf32>
    %9 = vector.shape_cast %8 : vector<1x16x4xf32> to vector<16x4xf32>
    %10 = arith.mulf %9, %0 : vector<16x4xf32>
    %11 = tpu.concatenate %4, %7, %10, %0 in 1 : vector<16x4xf32>, vector<16x4xf32>, vector<16x4xf32>, vector<16x4xf32> -> vector<16x16xf32>
    %c0_10 = arith.constant 0 : index
    %c0_11 = arith.constant 0 : index
    %c0_12 = arith.constant 0 : index
    %12 = vector.load %arg3[%c0_10, %c0_11, %c0_12] : memref<3x8x8xf32, #tpu.memory_space<vmem>>, vector<1x8x8xf32>
    %13 = vector.shape_cast %12 : vector<1x8x8xf32> to vector<8x8xf32>
    %14 = arith.mulf %13, %1 : vector<8x8xf32>
    %c1_13 = arith.constant 1 : index
    %c0_14 = arith.constant 0 : index
    %c0_15 = arith.constant 0 : index
    %15 = vector.load %arg3[%c1_13, %c0_14, %c0_15] : memref<3x8x8xf32, #tpu.memory_space<vmem>>, vector<1x8x8xf32>
    %16 = vector.shape_cast %15 : vector<1x8x8xf32> to vector<8x8xf32>
    %17 = arith.mulf %16, %1 : vector<8x8xf32>
    %c2_16 = arith.constant 2 : index
    %c0_17 = arith.constant 0 : index
    %c0_18 = arith.constant 0 : index
    %18 = vector.load %arg3[%c2_16, %c0_17, %c0_18] : memref<3x8x8xf32, #tpu.memory_space<vmem>>, vector<1x8x8xf32>
    %19 = vector.shape_cast %18 : vector<1x8x8xf32> to vector<8x8xf32>
    %20 = arith.mulf %19, %1 : vector<8x8xf32>
    %21 = tpu.concatenate %14, %17, %20, %1 in 1 : vector<8x8xf32>, vector<8x8xf32>, vector<8x8xf32>, vector<8x8xf32> -> vector<8x32xf32>
    %c0_19 = arith.constant 0 : index
    %c0_20 = arith.constant 0 : index
    %22 = vector.load %arg5[%c0_19, %c0_20] : memref<16x32xf32, #tpu.memory_space<vmem>>, vector<16x32xf32>
    %cst = arith.constant dense<0.000000e+00> : vector<16x32xf32>
    %23 = tpu.matmul %11, %22, %cst {dimension_numbers = #tpu.dot_dimension_numbers<[1], [0], [0], [1], [0, 0, 1, 1], [], []>} : vector<16x16xf32>, vector<16x32xf32>, vector<16x32xf32> -> vector<16x32xf32>
    %c0_21 = arith.constant 0 : index
    %c0_22 = arith.constant 0 : index
    %24 = vector.load %arg6[%c0_21, %c0_22] : memref<32x32xf32, #tpu.memory_space<vmem>>, vector<32x32xf32>
    %cst_23 = arith.constant dense<0.000000e+00> : vector<8x32xf32>
    %25 = tpu.matmul %21, %24, %cst_23 {dimension_numbers = #tpu.dot_dimension_numbers<[1], [0], [0], [1], [0, 0, 1, 1], [], []>} : vector<8x32xf32>, vector<32x32xf32>, vector<8x32xf32> -> vector<8x32xf32>
    %cst_24 = arith.constant dense<0.000000e+00> : vector<16xf32>
    %26 = vector.multi_reduction <add>, %0, %cst_24 [1] : vector<16x4xf32> to vector<16xf32>
    %27 = vector.shape_cast %26 : vector<16xf32> to vector<16x1xf32>
    %cst_25 = arith.constant 1.000000e+00 : f32
    %28 = vector.broadcast %cst_25 : f32 to vector<16x1xf32>
    %29 = arith.addf %27, %28 : vector<16x1xf32>
    %cst_26 = arith.constant 5.000000e+00 : f32
    %30 = vector.broadcast %cst_26 : f32 to vector<16x1xf32>
    %31 = arith.divf %30, %29 : vector<16x1xf32>
    %cst_27 = arith.constant dense<0.000000e+00> : vector<8xf32>
    %32 = vector.multi_reduction <add>, %1, %cst_27 [1] : vector<8x8xf32> to vector<8xf32>
    %33 = vector.shape_cast %32 : vector<8xf32> to vector<8x1xf32>
    %cst_28 = arith.constant 1.000000e+00 : f32
    %34 = vector.broadcast %cst_28 : f32 to vector<8x1xf32>
    %35 = arith.addf %33, %34 : vector<8x1xf32>
    %cst_29 = arith.constant 9.000000e+00 : f32
    %36 = vector.broadcast %cst_29 : f32 to vector<8x1xf32>
    %37 = arith.divf %36, %35 : vector<8x1xf32>
    %38 = vector.broadcast %31 : vector<16x1xf32> to vector<16x32xf32>
    %39 = arith.mulf %23, %38 : vector<16x32xf32>
    %cst_30 = arith.constant 0.000000e+00 : f32
    %40 = vector.broadcast %cst_30 : f32 to vector<16x32xf32>
    %41 = arith.maximumf %39, %40 : vector<16x32xf32>
    %c0_31 = arith.constant 0 : index
    %c0_32 = arith.constant 0 : index
    %42 = vector.load %arg7[%c0_31, %c0_32] : memref<16x32xf32, #tpu.memory_space<vmem>>, vector<16x32xf32>
    tpu.vector_store %arg7[%c0_31, %c0_32], %41 {strides = array<i32>} : memref<16x32xf32, #tpu.memory_space<vmem>>, vector<16x32xf32>,
    %43 = vector.broadcast %37 : vector<8x1xf32> to vector<8x32xf32>
    %44 = arith.mulf %25, %43 : vector<8x32xf32>
    %cst_33 = arith.constant 0.000000e+00 : f32
    %45 = vector.broadcast %cst_33 : f32 to vector<8x32xf32>
    %46 = arith.maximumf %44, %45 : vector<8x32xf32>
    %c0_34 = arith.constant 0 : index
    %c0_35 = arith.constant 0 : index
    %47 = vector.load %arg8[%c0_34, %c0_35] : memref<8x32xf32, #tpu.memory_space<vmem>>, vector<8x32xf32>
    tpu.vector_store %arg8[%c0_34, %c0_35], %46 {strides = array<i32>} : memref<8x32xf32, #tpu.memory_space<vmem>>, vector<8x32xf32>,
    return
  }
  func.func @transform_0(%arg0: i32) -> (i32, i32, i32) {
    %c0_i32 = arith.constant 0 : i32
    %c0_i32_0 = arith.constant 0 : i32
    %c0_i32_1 = arith.constant 0 : i32
    return %c0_i32, %arg0, %c0_i32_0 : i32, i32, i32
  }
  func.func @transform_1(%arg0: i32) -> (i32, i32) {
    %c0_i32 = arith.constant 0 : i32
    %c0_i32_0 = arith.constant 0 : i32
    return %arg0, %c0_i32 : i32, i32
  }
  func.func @transform_2(%arg0: i32) -> (i32, i32, i32) {
    %c0_i32 = arith.constant 0 : i32
    %c0_i32_0 = arith.constant 0 : i32
    %c0_i32_1 = arith.constant 0 : i32
    return %c0_i32, %arg0, %c0_i32_0 : i32, i32, i32
  }
  func.func @transform_3(%arg0: i32) -> (i32, i32) {
    %c0_i32 = arith.constant 0 : i32
    %c0_i32_0 = arith.constant 0 : i32
    return %arg0, %c0_i32 : i32, i32
  }
  func.func @transform_4(%arg0: i32) -> (i32, i32) {
    %c0_i32 = arith.constant 0 : i32
    %c0_i32_0 = arith.constant 0 : i32
    %c0_i32_1 = arith.constant 0 : i32
    return %c0_i32, %c0_i32_0 : i32, i32
  }
  func.func @transform_5(%arg0: i32) -> (i32, i32) {
    %c0_i32 = arith.constant 0 : i32
    %c0_i32_0 = arith.constant 0 : i32
    %c0_i32_1 = arith.constant 0 : i32
    return %c0_i32, %c0_i32_0 : i32, i32
  }
  func.func @transform_6(%arg0: i32) -> (i32, i32) {
    %c0_i32 = arith.constant 0 : i32
    %c0_i32_0 = arith.constant 0 : i32
    return %arg0, %c0_i32 : i32, i32
  }
  func.func @transform_7(%arg0: i32) -> (i32, i32) {
    %c0_i32 = arith.constant 0 : i32
    %c0_i32_0 = arith.constant 0 : i32
    return %arg0, %c0_i32 : i32, i32
  }
}

</mosaic_0001>

<bundles_post_ra>
// kernel: tokenizer_forward.1
= control target key start
LH: loop header
LB: loop body
LE: loop exit
PB: predicated region body
PF: predicated region fallthrough
CT: control target
= control target key end

     0   :  { %v356_v7 = vmov 0.0|0.0   ;;  %s357_s16 = smov 8   ;;  %vm359_vm0 = vmmov 0   ;;  %v360_v30 = vmov 0.0   ;;  %s362_s12 = smov 16   ;;  %vm66_vm1 = vcmask 31744   ;;  %s482_s0 = inlined_call_operand.vmem [shape: f32[3,16,4], index: 0, kind: input, shape index: {}]   ;;  %s483_s1 = inlined_call_operand.vmem [shape: f32[16,4], index: 1, kind: input, shape index: {}]   ;;  %s484_s2 = inlined_call_operand.vmem [shape: f32[3,8,8], index: 2, kind: input, shape index: {}]   ;;  %s485_s3 = inlined_call_operand.vmem [shape: f32[8,8], index: 3, kind: input, shape index: {}]   ;;  %s486_s4 = inlined_call_operand.vmem [shape: f32[16,32], index: 4, kind: input, shape index: {}]   ;;  %s487_s5 = inlined_call_operand.vmem [shape: f32[32,32], index: 5, kind: input, shape index: {}]   ;;  %s488_s6 = inlined_call_operand.vmem [shape: f32[16,32], index: 6, kind: output, shape index: {0}]   ;;  %s489_s7 = inlined_call_operand.vmem [shape: f32[8,32], index: 7, kind: output, shape index: {1}]  }
   0x1   :  { %v25_v0 = vld [vmem:[%s483_s1] sm:$0xff]  ;;  %v26_v1 = vld [vmem:[%s483_s1 + $0x8] sm:$0xff]  ;;  %v296_v4 = vld [vmem:[%s482_s0 + $0x10] sm:$0xff]  ;;  %336 = vmatprep.subr.bf16.mxu1 %v356_v7  ;;  %329 = vmatprep.mubr.msk.f32.mxu1 %vm359_vm0, %v360_v30  ;;  %s363_s1 = smov 24   ;;  %vm69_vm2 = vcmask 64512   ;;  %vm72_vm3 = vcmask 97280  }
   0x2   :  { %v298_v2 = vld [vmem:[%s482_s0 + $0x20] sm:$0xff]  ;;  %v299_v5 = vld [vmem:[%s482_s0 + $0x28] sm:$0xff]  ;;  %v297_v6 = vld [vmem:[%s482_s0 + $0x18] sm:$0xff]  ;;  %v35_v8 = vmul.f32 %v296_v4, %v25_v0  ;;  %v264_v32 = vsel %vm66_vm1, %v26_v1, 0.0  ;;  %v261_v33 = vsel %vm66_vm1, %v25_v0, 0.0  ;;  %vm96_vm4 = vcmask 130048  }
   0x3   :  { %v40_v3 = vmul.f32 %v298_v2, %v25_v0  ;;  %v27_v9 = vld [vmem:[%s485_s3] sm:$0xff]  ;;  %v300_v10 = vld [vmem:[%s484_s2 + $0x8] sm:$0xff]  ;;  %v41_v11 = vmul.f32 %v299_v5, %v26_v1  ;;  %s358_s3 = smov 4   ;;  %v36_v15 = vmul.f32 %v297_v6, %v26_v1  ;;  %v185_v25 = vld [vmem:[%s487_s5 + $0x10] sm:$0xff]  ;;  %vm98_vm5 = vcmask 195584  }
   0x4   :  { %v28_v12 = vld [vmem:[%s482_s0] sm:$0xff]  ;;  %v29_v13 = vld [vmem:[%s482_s0 + $0x8] sm:$0xff]  ;;  %44 = vrot.lane.b32.xlu0 %v35_v8, %s358_s3  ;;  %v186_v26 = vld [vmem:[%s487_s5 + $0x18] sm:$0xff]  ;;  %v79_v27 = vmul.f32 %v300_v10, %v27_v9  ;;  %v273_v34 = vsel %vm69_vm2, %v27_v9, 0.0  ;;  %vm187_vm6 = vcmask 261120  }
   0x5   :  { %52 = vrot.lane.b32.xlu1 %v40_v3, %s357_s16  ;;  %v75_v14 = vld [vmem:[%s484_s2] sm:$0xff]  ;;  %v30_v16 = vmul.f32 %v28_v12, %v25_v0  ;;  %v31_v17 = vmul.f32 %v29_v13, %v26_v1  ;;  %v101_v20 = vld [vmem:[%s486_s4 + $0x8] sm:$0xff]  ;;  %v301_v28 = vld [vmem:[%s484_s2 + $0x10] sm:$0xff]  ;;  %v340_v29 = vpack.c.bf16 %v186_v26, %v185_v25 }
   0x6   :  { %v76_v18 = vmul.f32 %v75_v14, %v27_v9  ;;  %v100_v19 = vld [vmem:[%s486_s4] sm:$0xff]  ;;  %v184_v23 = vld [vmem:[%s487_s5 + $0x8] sm:$0xff]  ;;  %v82_v31 = vmul.f32 %v301_v28, %v27_v9 }
   0x7   :  { %v183_v21 = vld [vmem:[%s487_s5] sm:$0xff]  ;;  %v332_v22 = vpack.c.bf16 %v101_v20, %v100_v19  ;;  %s361_s5 = smov 12  }
   0x8   :  { %v337_v24 = vpack.c.bf16 %v184_v23, %v183_v21  ;;  %46 = vrot.lane.b32.xlu0 %v36_v15, %s358_s3 }
   0x9   :  { %54 = vrot.lane.b32.xlu1 %v41_v11, %s357_s16  ;;  %333 = vmatprep.subr.bf16.mxu0 %v332_v22 }
   0xa   :  { %335 = vmatpush3.bf16.msra.mxu0 %v332_v22  ;;  %338 = vmatpush3.bf16.msra.mxu1 %v337_v24 }
   0xb   :  { %339 = vmatprep.subr.bf16.mxu1 %v356_v7 }
   0xc   :  { %60 = vrot.lane.b32.xlu0 %v25_v0, %s361_s5 }
   0xd   :  { %84 = vrot.lane.b32.xlu1 %v79_v27, %s357_s16 }
   0xe   :  { %341 = vmatpush3.bf16.msra.mxu1 %v340_v29 }
  0x10   :  { %62 = vrot.lane.b32.xlu0 %v26_v1, %s361_s5 }
  0x11   :  { %88 = vrot.lane.b32.xlu1 %v82_v31, %s362_s12 }
  0x14   :  { %92 = vrot.lane.b32.xlu0 %v27_v9, %s363_s1 }
  0x33   :  { %265 = vadd.xlane.f32.xlu0 %v264_v32 }
  0x35   :  { %262 = vadd.xlane.f32.xlu1 %v261_v33 }
  0x37   :  { %274 = vadd.xlane.f32.xlu0 %v273_v34 }
  0x76   :  { %v45_v36 = vpop.permute.xlu0 %44 }
  0x77   :  { %v53_v35 = vpop.permute.xlu1 %52  ;;  %v67_v39 = vsel %vm66_vm1, %v30_v16, %v45_v36 }
  0x78   :  { %v70_v42 = vsel %vm69_vm2, %v67_v39, %v53_v35 }
  0x7a   :  { %v47_v38 = vpop.permute.xlu0 %46 }
  0x7b   :  { %v55_v37 = vpop.permute.xlu1 %54  ;;  %v68_v43 = vsel %vm66_vm1, %v31_v17, %v47_v38 }
  0x7c   :  { %v71_v46 = vsel %vm69_vm2, %v68_v43, %v55_v37 }
  0x7e   :  { %v61_v41 = vpop.permute.xlu0 %60 }
  0x7f   :  { %v85_v40 = vpop.permute.xlu1 %84  ;;  %v73_v44 = vsel %vm72_vm3, %v70_v42, %v61_v41 }
  0x80   :  { %318 = vmatprep.mubr.msk.f32.mxu0 %vm96_vm4, %v73_v44  ;;  %v95_v47 = vsel %vm69_vm2, %v76_v18, %v85_v40 }
  0x82   :  { %v63_v45 = vpop.permute.xlu0 %62 }
  0x83   :  { %v89_v48 = vpop.permute.xlu1 %88  ;;  %v74_v49 = vsel %vm72_vm3, %v71_v46, %v63_v45 }
  0x84   :  { %319 = vmatmul.mubr.msk.f32.vlgmr.msra.gmra.mrb[0].mxu0 %vm96_vm4, %v74_v49  ;;  %v97_v50 = vsel %vm96_vm4, %v95_v47, %v89_v48 }
  0x86   :  { %v93_v51 = vpop.permute.xlu0 %92 }
  0x87   :  { %v99_v52 = vsel %vm98_vm5, %v97_v50, %v93_v51 }
  0x88   :  { %330 = vmatmul.mubr.msk.f32.vlgmr.msra.gmra.mrb[0].mxu1 %vm187_vm6, %v99_v52 }
  0xc0   :  { %v266_v53 = vpop.xlane.xlu0 %265 }
  0xc1   :  { %v268_v55 = vadd.f32 1.0, %v266_v53 }
  0xc2   :  { %v263_v54 = vpop.xlane.xlu1 %262 }
  0xc3   :  { %v267_v56 = vadd.f32 1.0, %v263_v54  ;;  %350 = vrcp.f32 %v268_v55 }
  0xc4   :  { %v275_v57 = vpop.xlane.xlu0 %274 }
  0xc5   :  { %v276_v58 = vadd.f32 1.0, %v275_v57  ;;  %352 = vrcp.f32 %v267_v56 }
  0xc7   :  { %354 = vrcp.f32 %v276_v58 }
  0xcd   :  { %v351_v59 = vpop.eup %350 }
  0xce   :  { %v272_v61 = vmul.f32 5.0, %v351_v59 }
  0xcf   :  { %v353_v60 = vpop.eup %352 }
  0xd0   :  { %v270_v63 = vmul.f32 5.0, %v353_v60 }
  0xd1   :  { %v355_v62 = vpop.eup %354 }
  0xd2   :  { %v278_v3 = vmul.f32 9.0, %v355_v62 }
 0x157   :  { %v320_v0 = vpop.f32.mrb[0].mxu0 }
 0x158   :  { %v280_v1 = vmul.f32 %v320_v0, %v272_v61  ;;  %v174_v2 = vpop.f32.mrb[1].mxu0 }
 0x159   :  { %v279_v4 = vmul.f32 %v270_v63, %v174_v2 }
 0x15a   :  { %v282_v5 = vmax.f32 %v280_v1, 0.0 }
 0x15b   :  { %v281_v6 = vmax.f32 %v279_v4, 0.0  ;;  %v257_v7 = vpop.f32.mrb[0].mxu1 }
 0x15c   :  { %284 = vst.msk [vmem:[%s488_s6 + $0x8] sm:$0xff] %vm187_vm6, %v282_v5  ;;  %v285_v8 = vmul.f32 %v278_v3, %v257_v7  ;;  %v331_v9 = vpop.f32.mrb[1].mxu1 }
 0x15d   :  { %283 = vst.msk [vmem:[%s488_s6] sm:$0xff] %vm187_vm6, %v281_v6 }
 0x15e   :  { %v286_v10 = vmax.f32 %v285_v8, 0.0 }
 0x160   :  { %287 = vst.msk [vmem:[%s489_s7] sm:$0xff] %vm187_vm6, %v286_v10 }

</bundles_post_ra>
